<compile_context>
chip_gen: v6e
topology: v6e:2x2x1
jax: 0.10.0
libtpu: 0.0.40
codegen_flags: <defaults>
</compile_context>

<pallas_src>
import jax
import jax.numpy as jnp
from jax.experimental import pallas as pl
from jax.experimental.pallas import tpu as pltpu


def _round_up(x, m):
    return ((x + m - 1) // m) * m


def _vmem_capacity_bytes():
    """Physical VMEM of the current chip; conservative (v7x) fallback."""
    try:
        info = pltpu.get_tpu_info()
        cap = getattr(info, "vmem_capacity_bytes", None)
        if cap:
            return int(cap)
    except Exception:
        pass
    return 64 * 1024 * 1024


def _lane_partial_sums(x_ref, valid_cols, tile_cols):
    """Fold the first `valid_cols` columns of a (tr, tile_cols) ref tile into
    (tr, 128) f32 lane-partial sums.

    tile_cols must be a multiple of 128. Data is read per 128-lane slab and
    upcast per slab (no full-tile f32 temporary). The lane mask is only
    emitted for a partially-valid slab, so fully-valid tiles stay pure VPU
    adds; slabs entirely past valid_cols are never read.
    """
    n_slabs = -(-valid_cols // 128)  # ceil
    partial = None
    for g in range(n_slabs):
        slab = x_ref[:, g * 128:(g + 1) * 128].astype(jnp.float32)
        valid = valid_cols - g * 128
        if valid < 128:
            lane = jax.lax.broadcasted_iota(jnp.int32, slab.shape, 1)
            slab = jnp.where(lane < valid, slab, 0.0)
        partial = slab if partial is None else partial + slab
    return partial


def _make_single_tile_kernel(cols):
    """cols == column tile: no accumulator, no phases — sum, divide, store."""
    inv_denom = 1.0 / float(cols)
    full = (cols // 128) * 128
    rem = cols - full

    def kernel(x_ref, o_ref):
        total = None
        if full:
            partial = None
            for g in range(full // 128):
                slab = x_ref[:, g * 128:(g + 1) * 128].astype(jnp.float32)
                partial = slab if partial is None else partial + slab
            total = jnp.sum(partial, axis=-1, keepdims=True)
        if rem:
            tail = jnp.sum(x_ref[:, full:cols].astype(jnp.float32),
                           axis=-1, keepdims=True)
            total = tail if total is None else total + tail
        o_ref[...] = (total * inv_denom).astype(o_ref.dtype)

    return kernel


def _make_multi_tile_kernel(cols, tc, num_col_tiles):
    """cols spans several column tiles: lane-dense f32 accumulator, masked and
    cross-lane work deferred to the last column tile."""
    inv_denom = 1.0 / float(cols)
    last_k = num_col_tiles - 1
    last_valid = cols - last_k * tc          # in (0, tc]
    ragged = last_valid != tc

    def kernel(x_ref, o_ref, acc_ref):
        k = pl.program_id(1)

        @pl.when(k == 0)
        def _():
            acc_ref[...] = jnp.zeros_like(acc_ref)

        if ragged:
            # Hot path: interior tiles, unmasked pure-VPU adds.
            @pl.when(k != last_k)
            def _():
                acc_ref[...] += _lane_partial_sums(x_ref, tc, tc)

            # Final ragged tile: masked path runs once per row tile.
            @pl.when(k == last_k)
            def _():
                acc_ref[...] += _lane_partial_sums(x_ref, last_valid, tc)
        else:
            acc_ref[...] += _lane_partial_sums(x_ref, tc, tc)

        @pl.when(k == last_k)
        def _():
            # Single cross-lane (XLU) reduction and single divide per row tile.
            total = jnp.sum(acc_ref[...], axis=-1, keepdims=True)
            o_ref[...] = (total * inv_denom).astype(o_ref.dtype)

    return kernel


def adaptive_avg_pool2d(x):
    """Equivalent of F.avg_pool2d(x, kernel_size=(H, W)) -> (N, C, 1, 1)."""
    N, C, H, W = x.shape
    rows = N * C
    cols = H * W
    x2 = x.reshape(rows, cols)          # HBM traffic stays in the input dtype
    itemsize = jnp.dtype(x2.dtype).itemsize

    # ---- generation-aware VMEM budget --------------------------------------
    phys_vmem = _vmem_capacity_bytes()
    if phys_vmem >= 128 * 1024 * 1024:      # v5e / v6e
        vmem_limit = 56 * 1024 * 1024
    else:                                    # v7x (64 MiB) or unknown
        vmem_limit = 32 * 1024 * 1024
    usable = vmem_limit - 2 * 1024 * 1024    # headroom for compiler scratch

    # ---- column (reduction-axis) tile --------------------------------------
    # Full spatial extent when it fits in one tile; otherwise lane-aligned
    # 8192-wide chunks (keeps the unrolled slab fold to <= 64 VPU adds).
    max_tc = 8192
    if cols <= max_tc:
        tc = cols
        num_col_tiles = 1
    else:
        tc = max_tc
        num_col_tiles = pl.cdiv(cols, tc)
    tc_padded = _round_up(tc, 128)      # VMEM lays lanes out 128 wide

    # ---- row tile: fill the budget, lane-padded accounting ------------------
    # Per block row: 2x double-buffered input + 3 f32 working/acc slabs
    # (acc scratch, running partial, current slab) + 2x lane-padded output.
    per_row = 2 * tc_padded * itemsize + 3 * 128 * 4 + 2 * 128 * itemsize
    max_tr = max(8, (usable // per_row) // 8 * 8)

    rows_padded = _round_up(rows, 8)
    # Prefer >= 2 row tiles: overlaps DMA with compute and lets the "parallel"
    # row axis shard across v7x's two TensorCores.
    if rows_padded >= 16:
        target_tr = _round_up(rows_padded // 2, 8)
    else:
        target_tr = rows_padded
    tr = max(8, min(max_tr, target_tr))
    if rows < 8:
        tr = rows                        # full-dim block satisfies tiling rule

    num_row_tiles = pl.cdiv(rows, tr)
    out_shape = jax.ShapeDtypeStruct((rows, 1), x.dtype)

    if num_col_tiles == 1:
        out = pl.pallas_call(
            _make_single_tile_kernel(cols),
            out_shape=out_shape,
            grid_spec=pltpu.PrefetchScalarGridSpec(
                num_scalar_prefetch=0,
                grid=(num_row_tiles,),
                in_specs=[pl.BlockSpec((tr, tc), lambda i: (i, 0))],
                out_specs=pl.BlockSpec((tr, 1), lambda i: (i, 0)),
            ),
            compiler_params=pltpu.CompilerParams(
                dimension_semantics=("parallel",),
                vmem_limit_bytes=vmem_limit,
            ),
        )(x2)
    else:
        out = pl.pallas_call(
            _make_multi_tile_kernel(cols, tc, num_col_tiles),
            out_shape=out_shape,
            grid_spec=pltpu.PrefetchScalarGridSpec(
                num_scalar_prefetch=0,
                grid=(num_row_tiles, num_col_tiles),
                in_specs=[pl.BlockSpec((tr, tc), lambda i, k: (i, k))],
                out_specs=pl.BlockSpec((tr, 1), lambda i, k: (i, 0)),
                scratch_shapes=[pltpu.VMEM((tr, 128), jnp.float32)],
            ),
            compiler_params=pltpu.CompilerParams(
                dimension_semantics=("parallel", "arbitrary"),
                vmem_limit_bytes=vmem_limit,
            ),
        )(x2)

    return out.reshape(N, C, 1, 1)


if __name__ == "__main__":
    key = jax.random.PRNGKey(0)

    # Primary check: small shape consistent with the module (batch=2,
    # channels=4, spatial=16) — exercises the single-column-tile fast path.
    x = jax.random.normal(key, (2, 4, 16, 16), dtype=jnp.float32)
    y = jax.block_until_ready(adaptive_avg_pool2d(x))
    ref = jnp.mean(x, axis=(2, 3), keepdims=True)
    assert y.shape == (2, 4, 1, 1), y.shape
    assert jnp.allclose(y, ref, atol=1e-5, rtol=1e-5), "mismatch (single tile)"

    # Secondary check: spatial > 8192 with a ragged tail — exercises the
    # multi-column-tile accumulator path and the gated lane mask.
    x2 = jax.random.normal(jax.random.PRNGKey(1), (2, 4, 91, 91),
                           dtype=jnp.float32)
    y2 = jax.block_until_ready(adaptive_avg_pool2d(x2))
    ref2 = jnp.mean(x2, axis=(2, 3), keepdims=True)
    assert y2.shape == (2, 4, 1, 1), y2.shape
    assert jnp.allclose(y2, ref2, atol=1e-5, rtol=1e-5), "mismatch (multi tile)"

    print("KERNEL_OK")
</pallas_src>

<mosaic_0001>
module attributes {stable_mosaic.version = 11 : i64} {
  func.func @kernel(%arg0: i32, %arg1: memref<8x256xf32, #tpu.memory_space<vmem>>, %arg2: memref<8x1xf32, #tpu.memory_space<vmem>>) attributes {dimension_semantics = [#tpu.dimension_semantics<parallel>], iteration_bounds = array<i64: 1>, scalar_prefetch = 0 : i64, scratch_operands = 0 : i64, tpu.core_type = #tpu.core_type<tc>, window_params = [{transform_indices = @transform_0, window_bounds = array<i64: 8, 256>}, {transform_indices = @transform_1, window_bounds = array<i64: 8, 1>}]} {
    %c0 = arith.constant 0 : index
    %c0_0 = arith.constant 0 : index
    %0 = vector.load %arg1[%c0, %c0_0] : memref<8x256xf32, #tpu.memory_space<vmem>>, vector<8x128xf32>
    %c0_1 = arith.constant 0 : index
    %c128 = arith.constant 128 : index
    %1 = vector.load %arg1[%c0_1, %c128] : memref<8x256xf32, #tpu.memory_space<vmem>>, vector<8x128xf32>
    %2 = arith.addf %0, %1 : vector<8x128xf32>
    %cst = arith.constant dense<0.000000e+00> : vector<8xf32>
    %3 = vector.multi_reduction <add>, %2, %cst [1] : vector<8x128xf32> to vector<8xf32>
    %4 = vector.shape_cast %3 : vector<8xf32> to vector<8x1xf32>
    %cst_2 = arith.constant 3.906250e-03 : f32
    %5 = vector.broadcast %cst_2 : f32 to vector<8x1xf32>
    %6 = arith.mulf %4, %5 : vector<8x1xf32>
    %c0_3 = arith.constant 0 : index
    %c0_4 = arith.constant 0 : index
    %7 = vector.load %arg2[%c0_3, %c0_4] : memref<8x1xf32, #tpu.memory_space<vmem>>, vector<8x1xf32>
    tpu.vector_store %arg2[%c0_3, %c0_4], %6 {strides = array<i32>} : memref<8x1xf32, #tpu.memory_space<vmem>>, vector<8x1xf32>,
    return
  }
  func.func @transform_0(%arg0: i32) -> (i32, i32) {
    %c0_i32 = arith.constant 0 : i32
    %c0_i32_0 = arith.constant 0 : i32
    return %arg0, %c0_i32 : i32, i32
  }
  func.func @transform_1(%arg0: i32) -> (i32, i32) {
    %c0_i32 = arith.constant 0 : i32
    %c0_i32_0 = arith.constant 0 : i32
    return %arg0, %c0_i32 : i32, i32
  }
}

</mosaic_0001>

<bundles_post_ra>
// kernel: tpu_custom_call.1
= control target key start
LH: loop header
LB: loop body
LE: loop exit
PB: predicated region body
PF: predicated region fallthrough
CT: control target
= control target key end

     0   :  { %6 = vsyncpa [#allocation3], 0  ;;  %s56_s6 = smov [#allocation2]   ;;  %s73_s0 = inlined_call_operand.hbm [shape: f32[8,256], index: 0, kind: input, shape index: {}]   ;;  %s74_s1 = inlined_call_operand.vmem [shape: f32[8,1], index: 1, kind: output, shape index: {}]  }
   0x1   :  { %s13_s7 = sshll.u32 %s56_s6, 4  ;;  %s14_s7 = int_to_ptr.vmem [resolvable:$true] %s13_s7 }
   0x2   :  { %s42_s8 = scalar_lea.vmem %s14_s7, 256  ;;  %p47_p1 = scmp.lt.s32.totalorder %s14_s7, %s14_s7 }
   0x3   :  { %p43_p0 = scmp.ne.s32.totalorder %s14_s7, %s42_s8  ;;  %p48_p2 = scmp.lt.s32.totalorder %s42_s8, %s42_s8 }
   0x5   :  { %p49_p3 = por %p48_p2, %p47_p1 }
   0x7   :  { %p50_p4 = pnand %p49_p3, %p43_p0 }
   0x9   :  { %53 = shalt.err (!%p50_p4)
}
   0xa   :  { %16 = dma.hbm_to_vmem [thread:$0]  %s73_s0, 256, %s14_s7, [#allocation3]  }
   0xb   :  { %54 = dma.done.wait [#allocation3], 256  }
   0xc   :  { %55 = vsyncadd [#allocation3], 4294967040  ;;  %v20_v0 = vld [vmem:[#allocation2] sm:$0xff]  ;;  %v21_v1 = vld [vmem:[#allocation2 + $0x8] sm:$0xff]  ;;  %vm26_vm0 = vcmask 7168  }
   0xd   :  { %v22_v2 = vadd.f32 %v21_v1, %v20_v0 }
   0xf   :  { %23 = vadd.xlane.f32.xlu0 %v22_v2 }
  0x98   :  { %v24_v3 = vpop.xlane.xlu0 %23 }
  0x99   :  { %v25_v4 = vmul.f32 0.00390625, %v24_v3 }
  0x9b   :  { %27 = vst.msk [vmem:[%s74_s1] sm:$0xff] %vm26_vm0, %v25_v4 }
  0x9c   :  { %32 = vsyncpa [#allocation3], 1 }

</bundles_post_ra>
